<compile_context>
chip_gen: v6e
topology: v6e:2x2x1
jax: 0.10.0
libtpu: 0.0.40
codegen_flags: <defaults>
</compile_context>

<pallas_src>
import jax
import jax.numpy as jnp
import numpy as np
from jax.experimental import pallas as pl
from jax.experimental.pallas import tpu as pltpu

BOARD_SIZE = 16   # H = W = BOARD_SIZE
CHANNELS = 4      # in_channels of the conv layer
FC1_OUT = 256
FC2_OUT = 17
OUT_PAD = 128     # lane-dense padded output width


def _round_up(n, m):
    return ((n + m - 1) // m) * m


def _conv_as_matmul_matrix(conv_w, bn_scale, C, H, W):
    """Lower the 3x3 / pad=1 / 1-out-channel conv (BN scale folded) to a dense
    (C*H*W, H*W) matrix so the kernel can run the conv on the MXU.

    Row/col indices and the zero-padding masks are static numpy; only the
    C*9 tap weights are traced values (stays differentiable w.r.t. conv_w).
    """
    HW = H * W
    ys, xs = np.meshgrid(np.arange(H), np.arange(W), indexing="ij")
    p_out = (ys * W + xs).reshape(-1)                               # (HW,)
    rows, cols, taps = [], [], []
    for c in range(C):
        for dy in range(3):
            for dx in range(3):
                yin, xin = ys + dy - 1, xs + dx - 1
                valid = ((yin >= 0) & (yin < H) &
                         (xin >= 0) & (xin < W)).reshape(-1)
                p_in = (yin * W + xin).reshape(-1)
                rows.append((c * HW + p_in)[valid])
                cols.append(p_out[valid])
                taps.append(np.full(int(valid.sum()),
                                    c * 9 + dy * 3 + dx, np.int32))
    rows = np.concatenate(rows).astype(np.int32)
    cols = np.concatenate(cols).astype(np.int32)
    taps = np.concatenate(taps)
    w_flat = (conv_w.reshape(C * 9).astype(jnp.float32) *
              jnp.asarray(bn_scale, jnp.float32))
    return jnp.zeros((C * HW, HW), jnp.float32).at[rows, cols].set(w_flat[taps])


def value_head_kernel(bnb_ref, x_ref, m_ref, wc_ref, bc_ref, out_ref):
    """Fused ValueHead forward for one batch tile.

    bnb_ref : SMEM (1,)    f32   folded BatchNorm bias (added before ReLU)
    x_ref   : VMEM (tb, C*HW) f32  raw NCHW activations, flattened per row
    m_ref   : VMEM (C*HW, HW) bf16 conv-as-matmul matrix (BN scale folded)
    wc_ref  : VMEM (HW, 128)  bf16 fc1@fc2 folded weight, zero-padded 17->128
    bc_ref  : VMEM (1, 128)   f32  folded fc bias, zero-padded
    out_ref : VMEM (tb, 128)  f32  padded logits (first 17 cols valid)
    """
    # 3x3 conv (pad=1, 1 out ch, no bias) with BN scale folded: one MXU matmul.
    # M encodes the 36 (channel, dy, dx) taps with zero-padding masks baked in.
    xb = x_ref[...].astype(jnp.bfloat16)
    pre = jnp.dot(xb, m_ref[...], preferred_element_type=jnp.float32)  # (tb, HW)

    # BatchNorm bias (eval-mode fold) + ReLU; already flattened (tb, HW).
    hidden = jnp.maximum(pre + bnb_ref[0], 0.0)

    # fc1 and fc2 folded into one affine map (no activation between them in
    # the reference forward); lane-dense 128-wide padded output.
    out = jnp.dot(hidden.astype(jnp.bfloat16), wc_ref[...],
                  preferred_element_type=jnp.float32) + bc_ref[...]
    out_ref[...] = out


def value_head(x, conv_w, bn_scale, bn_bias, fc1_w, fc1_b, fc2_w, fc2_b,
               *, batch_tile=512):
    """x: (B, C, H, W) NCHW. fc weights in PyTorch nn.Linear layout (out, in).

    Returns (B, 17) value logits (float32), eval-mode BatchNorm.
    """
    B, C, H, W = x.shape
    assert H == BOARD_SIZE and W == BOARD_SIZE
    assert batch_tile % 8 == 0
    HW = H * W
    CHW = C * HW
    assert fc1_w.shape == (FC1_OUT, HW) and fc2_w.shape == (FC2_OUT, FC1_OUT)

    # --- conv (+ folded BN scale) as a resident bf16 MXU matrix.
    m = _conv_as_matmul_matrix(conv_w, bn_scale, C, H, W).astype(jnp.bfloat16)
    bnb = jnp.asarray(bn_bias, jnp.float32).reshape(1)

    # --- fold fc1 and fc2 into one affine map (valid: no activation between
    #     them in the reference forward); pad to lane-dense 128-wide output.
    w1t = fc1_w.astype(jnp.float32).T                      # (HW, 256)
    w2t = fc2_w.astype(jnp.float32).T                      # (256, 17)
    wc = w1t @ w2t                                         # (HW, 17)
    bc = fc1_b.astype(jnp.float32) @ w2t + fc2_b.astype(jnp.float32)
    wcp = (jnp.zeros((HW, OUT_PAD), jnp.float32)
           .at[:, :FC2_OUT].set(wc).astype(jnp.bfloat16))
    bcp = jnp.zeros((1, OUT_PAD), jnp.float32).at[:, :FC2_OUT].set(
        bc.reshape(1, FC2_OUT))

    # --- raw activations: lane-dense flatten of NCHW (free reshape).
    xf = x.astype(jnp.float32).reshape(B, CHW)

    # --- batch tiling: tb multiple of 8; guarantee >= 2 grid steps so the
    #     "parallel" axis can shard across both v7x TensorCores.
    tb = min(batch_tile, _round_up(pl.cdiv(B, 2), 8))
    n_tiles = max(2, pl.cdiv(B, tb))
    Bp = n_tiles * tb
    if Bp != B:
        xf = jnp.pad(xf, ((0, Bp - B), (0, 0)))

    out = pl.pallas_call(
        value_head_kernel,
        out_shape=jax.ShapeDtypeStruct((Bp, OUT_PAD), jnp.float32),
        grid=(n_tiles,),
        in_specs=[
            pl.BlockSpec(memory_space=pltpu.MemorySpace.SMEM),   # bn bias
            pl.BlockSpec((tb, CHW), lambda i: (i, 0)),           # activations
            pl.BlockSpec((CHW, HW), lambda i: (0, 0)),           # conv matrix (resident)
            pl.BlockSpec((HW, OUT_PAD), lambda i: (0, 0)),       # folded fc weight
            pl.BlockSpec((1, OUT_PAD), lambda i: (0, 0)),        # folded fc bias
        ],
        out_specs=pl.BlockSpec((tb, OUT_PAD), lambda i: (i, 0)),
        compiler_params=pltpu.CompilerParams(
            dimension_semantics=("parallel",),
            # Actual need is ~6-10 MiB at tb<=1024; 32 MiB leaves headroom on
            # every generation (half of v7x's 64 MiB physical VMEM).
            vmem_limit_bytes=32 * 1024 * 1024,
        ),
    )(bnb, xf, m, wcp, bcp)

    return out[:B, :FC2_OUT]


if __name__ == "__main__":
    B, C, H, W = 2, CHANNELS, BOARD_SIZE, BOARD_SIZE

    key = jax.random.PRNGKey(0)
    k = jax.random.split(key, 6)

    # deterministic synthetic parameters (shapes from ValueHead.__init__)
    x = jax.random.normal(k[0], (B, C, H, W), jnp.float32)
    conv_w = jax.random.normal(k[1], (1, C, 3, 3), jnp.float32) * 0.1   # Conv2d weight
    # BatchNorm2d(1) eval mode: gamma, beta, running_mean, running_var (eps=2e-5)
    gamma, beta, rmean, rvar, eps = 1.2, 0.1, 0.05, 0.8, 2e-5
    bn_scale = gamma / (rvar + eps) ** 0.5
    bn_bias = beta - rmean * bn_scale
    # nn.Linear layout: weight (out, in), y = x @ W.T + b
    fc1_w = jax.random.normal(k[2], (FC1_OUT, H * W), jnp.float32) * 0.05
    fc1_b = jax.random.normal(k[3], (FC1_OUT,), jnp.float32) * 0.01
    fc2_w = jax.random.normal(k[4], (FC2_OUT, FC1_OUT), jnp.float32) * 0.05
    fc2_b = jax.random.normal(k[5], (FC2_OUT,), jnp.float32) * 0.01

    out = value_head(x, conv_w, bn_scale, bn_bias, fc1_w, fc1_b, fc2_w, fc2_b)
    jax.block_until_ready(out)
    assert out.shape == (B, FC2_OUT) and out.dtype == jnp.float32

    # pure-JAX reference (eval-mode BN), same semantics as the PyTorch forward
    ref_conv = jax.lax.conv_general_dilated(
        x, conv_w, (1, 1), "SAME",
        dimension_numbers=("NCHW", "OIHW", "NCHW"))[:, 0]              # (B, H, W)
    ref_hidden = jnp.maximum(ref_conv * bn_scale + bn_bias, 0.0).reshape(B, H * W)
    ref = (ref_hidden @ fc1_w.T + fc1_b) @ fc2_w.T + fc2_b

    # bf16 matmul operands with f32 accumulation -> re-validated tolerance.
    assert jnp.allclose(out, ref, atol=2e-2, rtol=2e-2), \
        float(jnp.max(jnp.abs(out - ref)))

    print("KERNEL_OK")
</pallas_src>

<mosaic_0001>
module attributes {stable_mosaic.version = 11 : i64} {
  func.func @value_head_kernel(%arg0: i32, %arg1: memref<1xf32, #tpu.memory_space<smem>>, %arg2: memref<8x1024xf32, #tpu.memory_space<vmem>>, %arg3: memref<1024x256xbf16, #tpu.memory_space<vmem>>, %arg4: memref<256x128xbf16, #tpu.memory_space<vmem>>, %arg5: memref<1x128xf32, #tpu.memory_space<vmem>>, %arg6: memref<8x128xf32, #tpu.memory_space<vmem>>) attributes {dimension_semantics = [#tpu.dimension_semantics<parallel>], iteration_bounds = array<i64: 2>, scalar_prefetch = 0 : i64, scratch_operands = 0 : i64, tpu.core_type = #tpu.core_type<tc>, window_params = [{transform_indices = @transform_0, window_bounds = array<i64: 1>}, {transform_indices = @transform_1, window_bounds = array<i64: 8, 1024>}, {pipeline_mode = #tpu.pipeline_mode<synchronous>, transform_indices = @transform_2, window_bounds = array<i64: 1024, 256>}, {pipeline_mode = #tpu.pipeline_mode<synchronous>, transform_indices = @transform_3, window_bounds = array<i64: 256, 128>}, {pipeline_mode = #tpu.pipeline_mode<synchronous>, transform_indices = @transform_4, window_bounds = array<i64: 1, 128>}, {transform_indices = @transform_5, window_bounds = array<i64: 8, 128>}]} {
    %c0 = arith.constant 0 : index
    %c0_0 = arith.constant 0 : index
    %0 = vector.load %arg2[%c0, %c0_0] : memref<8x1024xf32, #tpu.memory_space<vmem>>, vector<8x1024xf32>
    %1 = arith.truncf %0 : vector<8x1024xf32> to vector<8x1024xbf16>
    %c0_1 = arith.constant 0 : index
    %c0_2 = arith.constant 0 : index
    %2 = vector.load %arg3[%c0_1, %c0_2] : memref<1024x256xbf16, #tpu.memory_space<vmem>>, vector<1024x256xbf16>
    %cst = arith.constant dense<0.000000e+00> : vector<8x256xf32>
    %3 = tpu.matmul %1, %2, %cst {dimension_numbers = #tpu.dot_dimension_numbers<[1], [0], [0], [1], [0, 0, 1, 1], [], []>} : vector<8x1024xbf16>, vector<1024x256xbf16>, vector<8x256xf32> -> vector<8x256xf32>
    %c0_3 = arith.constant 0 : index
    %4 = memref.load %arg1[%c0_3] : memref<1xf32, #tpu.memory_space<smem>>
    %5 = vector.broadcast %4 : f32 to vector<8x256xf32>
    %6 = arith.addf %3, %5 : vector<8x256xf32>
    %cst_4 = arith.constant 0.000000e+00 : f32
    %7 = vector.broadcast %cst_4 : f32 to vector<8x256xf32>
    %8 = arith.maximumf %6, %7 : vector<8x256xf32>
    %9 = arith.truncf %8 : vector<8x256xf32> to vector<8x256xbf16>
    %c0_5 = arith.constant 0 : index
    %c0_6 = arith.constant 0 : index
    %10 = vector.load %arg4[%c0_5, %c0_6] : memref<256x128xbf16, #tpu.memory_space<vmem>>, vector<256x128xbf16>
    %cst_7 = arith.constant dense<0.000000e+00> : vector<8x128xf32>
    %11 = tpu.matmul %9, %10, %cst_7 {dimension_numbers = #tpu.dot_dimension_numbers<[1], [0], [0], [1], [0, 0, 1, 1], [], []>} : vector<8x256xbf16>, vector<256x128xbf16>, vector<8x128xf32> -> vector<8x128xf32>
    %c0_8 = arith.constant 0 : index
    %c0_9 = arith.constant 0 : index
    %12 = vector.load %arg5[%c0_8, %c0_9] : memref<1x128xf32, #tpu.memory_space<vmem>>, vector<1x128xf32>
    %13 = vector.broadcast %12 : vector<1x128xf32> to vector<8x128xf32>
    %14 = arith.addf %11, %13 : vector<8x128xf32>
    %c0_10 = arith.constant 0 : index
    %c0_11 = arith.constant 0 : index
    %15 = vector.load %arg6[%c0_10, %c0_11] : memref<8x128xf32, #tpu.memory_space<vmem>>, vector<8x128xf32>
    tpu.vector_store %arg6[%c0_10, %c0_11], %14 {strides = array<i32>} : memref<8x128xf32, #tpu.memory_space<vmem>>, vector<8x128xf32>,
    return
  }
  func.func @transform_0(%arg0: i32) -> i32 {
    %c0_i32 = arith.constant 0 : i32
    %c0_i32_0 = arith.constant 0 : i32
    return %c0_i32 : i32
  }
  func.func @transform_1(%arg0: i32) -> (i32, i32) {
    %c0_i32 = arith.constant 0 : i32
    %c0_i32_0 = arith.constant 0 : i32
    return %arg0, %c0_i32 : i32, i32
  }
  func.func @transform_2(%arg0: i32) -> (i32, i32) {
    %c0_i32 = arith.constant 0 : i32
    %c0_i32_0 = arith.constant 0 : i32
    %c0_i32_1 = arith.constant 0 : i32
    return %c0_i32, %c0_i32_0 : i32, i32
  }
  func.func @transform_3(%arg0: i32) -> (i32, i32) {
    %c0_i32 = arith.constant 0 : i32
    %c0_i32_0 = arith.constant 0 : i32
    %c0_i32_1 = arith.constant 0 : i32
    return %c0_i32, %c0_i32_0 : i32, i32
  }
  func.func @transform_4(%arg0: i32) -> (i32, i32) {
    %c0_i32 = arith.constant 0 : i32
    %c0_i32_0 = arith.constant 0 : i32
    %c0_i32_1 = arith.constant 0 : i32
    return %c0_i32, %c0_i32_0 : i32, i32
  }
  func.func @transform_5(%arg0: i32) -> (i32, i32) {
    %c0_i32 = arith.constant 0 : i32
    %c0_i32_0 = arith.constant 0 : i32
    return %arg0, %c0_i32 : i32, i32
  }
}

</mosaic_0001>

<bundles_post_ra>
// kernel: tpu_custom_call.1
= control target key start
LH: loop header
LB: loop body
LE: loop exit
PB: predicated region body
PF: predicated region fallthrough
CT: control target
= control target key end

     0   :  { %s2345_s0 = inlined_call_operand.<no memory space> [shape: f32[1], index: 0, kind: input, shape index: {}]   ;;  %s2346_s1 = inlined_call_operand.hbm [shape: f32[16,1024], index: 1, kind: input, shape index: {}]   ;;  %s2347_s2 = inlined_call_operand.hbm [shape: bf16[1024,256], index: 2, kind: input, shape index: {}]   ;;  %s2348_s3 = inlined_call_operand.hbm [shape: bf16[256,128], index: 3, kind: input, shape index: {}]   ;;  %s2349_s4 = inlined_call_operand.vmem [shape: f32[1,128], index: 4, kind: input, shape index: {}]   ;;  %s2350_s5 = inlined_call_operand.hbm [shape: f32[16,128], index: 5, kind: output, shape index: {}]  }
   0x1   :  { %10 = sst [smem:[#allocation2]] %s2345_s0 }
   0x2   :  { %11 = vsyncpa [#allocation4], 0 }
   0x3   :  { %13 = vsyncpa [#allocation4 + $0x1], 0 }
   0x4   :  { %14 = vsyncpa [#allocation7], 0 }
   0x5   :  { %15 = vsyncpa [#allocation5], 0 }
   0x6   :  { %17 = vsyncpa [#allocation5 + $0x1], 0  ;;  %s2160_s20 = smov 0   ;;  %s2162_s21 = smov 0  }
   0x7   :  { %s2164_s22 = smov 0   ;;  %s2166_s23 = smov 0  }
   0x8 LB: > { %s2181_s0 = sadd.s32 4294967295, %s2117_s23   ;;  %s1505_s24 = sadd.s32 4294967294, %s2117_s23   ;;  %s2117_s23 = sphi %s2166_s23, %s2372_s23   ;;  %s2113_s22 = sphi %s2164_s22, %s2371_s22   ;;  %s2109_s21 = sphi %s2162_s21, %s2370_s21   ;;  %s2105_s20 = sphi %s2160_s20, %s2369_s20  }
   0x9   : > { %p64_p0 = scmp.ne.s32.totalorder %s2109_s21, %s2105_s20  ;;  %p2351_p1 = scmp.eq.s32.totalorder %s2181_s0, 0 }
   0xa   : > { %p157_p3 = scmp.eq.s32.totalorder %s1505_s24, 1  ;;  %p1506_p5 = scmp.ge.s32.totalorder %s2117_s23, 1 }
   0xb   : > { %p2190_p4 = por %p2351_p1, %p64_p0  ;;  %p164_p7 = scmp.lt.s32.totalorder %s2117_s23, 3 }
   0xc   : > { %p2195_p6 = por %p157_p3, %p64_p0  ;;  %s2119_s28 = smov [#allocation6]  }
   0xd   : > { %s2355_s25 = scalar_select %p2190_p4, 1, 0 }
   0xe   : > { %s2356_s26 = scalar_select %p2195_p6, 1, 0 }
   0xf   : > { %p2200_p8 = pnand %p1506_p5, %p164_p7  ;;  %s179_s29 = sshll.u32 %s2119_s28, 4  ;;  %s180_s29 = int_to_ptr.vmem [resolvable:$true] %s179_s29 }
  0x10   : > { %s2120_s6 = smov [#allocation8]   ;;  %s1980_s8 = scalar_lea.vmem %s180_s29, 16384 }
  0x11   : > { %s2357_s27 = scalar_select %p2200_p8, 1, 0 }
  0x12   : > { %p1702_p9 = pneg %p2200_p8  ;;  %s192_s7 = sshll.u32 %s2120_s6, 4  ;;  %s193_s7 = int_to_ptr.vmem [resolvable:$true] %s192_s7 }
  0x13   : > { %p1981_p13 = scmp.ne.s32.totalorder %s180_s29, %s1980_s8  ;;  %p1988_p5 = scmp.lt.s32.totalorder %s180_s29, %s180_s29 }
  0x14   : > { %p2209_p11 = pnand %p1702_p9, %p2351_p1  ;;  %p1989_p7 = scmp.lt.s32.totalorder %s1980_s8, %s1980_s8 }
  0x16   : > { %p1971_p12 = pneg %p2209_p11  ;;  %p1990_p10 = por %p1989_p7, %p1988_p5 }
  0x18   : > { %p1983_p0 = pnand %p1981_p13, %p1971_p12 }
  0x1a   : > { %p1984_p3 = pneg %p1983_p0 }
  0x1c   : > { %p1991_p9 = pnand %p1990_p10, %p1984_p3 }
  0x1e   : > { %1994 = shalt.err (!%p1991_p9)
}
  0x1f   : > { %s2121_s9 = smov 128   ;;  %s2122_s10 = smov 8  }
  0x20   : > { %1705 = dma.hbm_to_vmem [thread:$0]  (!%p2209_p11), %s2347_s2, 16384, %s180_s29, [#allocation7], %s2121_s9, %s2121_s9, %s2122_s10  }
  0x21   : > { %s2006_s13 = scalar_lea.vmem %s193_s7, 2048  ;;  %p2014_p2 = scmp.lt.s32.totalorder %s193_s7, %s193_s7 }
  0x22   : > { %p2007_p1 = scmp.ne.s32.totalorder %s193_s7, %s2006_s13  ;;  %p2015_p6 = scmp.lt.s32.totalorder %s2006_s13, %s2006_s13 }
  0x24   : > { %p2009_p13 = pnand %p2007_p1, %p1971_p12  ;;  %p2016_p5 = por %p2015_p6, %p2014_p2 }
  0x26   : > { %p2010_p0 = pneg %p2009_p13 }
  0x28   : > { %p2017_p10 = pnand %p2016_p5, %p2010_p0 }
  0x2a   : > { %2020 = shalt.err (!%p2017_p10)
}
  0x2b   : > { %s2123_s14 = smov 64   ;;  %s2124_s15 = smov 4  }
  0x2c   : > { %1708 = dma.hbm_to_vmem [thread:$0]  (!%p2209_p11), %s2348_s3, 2048, %s193_s7, [#allocation7], %s2123_s14, %s2123_s14, %s2124_s15  }
  0x2d   : > { %s2232_s18 = sadd.s32 1, %s2117_s23   ;;  %s51_s24 = sadd.s32 1, %s2113_s22 }
  0x2e   : > { %s48_s19 = ssub.s32 %s2117_s23, %s2232_s18  ;;  %p58_p2 = scmp.ne.s32.totalorder %s2113_s22, %s2109_s21 }
  0x2f   : > { %p49_p1 = scmp.eq.s32.totalorder %s48_s19, 0  ;;  %p59_p6 = scmp.eq.s32.totalorder %s2117_s23, 0 }
  0x30   : > { %p2359_p3 = scmp.eq.s32.totalorder %s2181_s0, 1  ;;  %p1719_p9 = scmp.lt.s32.totalorder %s2117_s23, 2 }
  0x31   : > { %s2241_s28 = scalar_select %p49_p1, %s2113_s22, %s51_s24  }
  0x32   : > { %p60_p12 = por %p59_p6, %p58_p2  ;;  %p2245_p7 = por %p2359_p3, %p58_p2 }
  0x33   : > { %s209_s30 = sand.u32 1, %s2113_s22   ;;  %s1667_s7 = sshll.u32 %s2117_s23, 10 }
  0x34   : > { %s2360_s29 = scalar_select %p2245_p7, 1, 0 }
  0x35   : > { %s1510_s6 = sshll.u32 %s209_s30, 6  ;;  %s2255_s10 = scalar_lea.hbm %s2346_s1, %s1667_s7 }
  0x36   : > { %s213_s11 = scalar_lea.vmem [#allocation3], %s1510_s6  ;;  %p2257_p11 = pnand %p1719_p9, %p60_p12 }
  0x37   : > { %s221_s12 = sshll.u32 %s213_s11, 4  ;;  %s210_s14 = scalar_lea.sflag [#allocation4], %s209_s30  ;;  %s222_s12 = int_to_ptr.vmem [resolvable:$true] %s221_s12 }
  0x38   : > { %s2021_s15 = scalar_lea.hbm %s2255_s10, 1024  ;;  %p2023_p0 = pneg %p2257_p11 }
  0x39   : > { %p2022_p13 = scmp.ne.s32.totalorder %s2255_s10, %s2021_s15  ;;  %s2026_s19 = scalar_lea.hbm %s2346_s1, 2048 }
  0x3a   : > { %p2027_p1 = scmp.lt.s32.totalorder %s2255_s10, %s2346_s1  ;;  %p2028_p2 = scmp.lt.s32.totalorder %s2026_s19, %s2021_s15 }
  0x3b   : > { %p2024_p5 = pnand %p2023_p0, %p2022_p13 }
  0x3c   : > { %p2029_p6 = por %p2028_p2, %p2027_p1 }
  0x3d   : > { %p2025_p10 = pneg %p2024_p5 }
  0x3f   : > { %p2030_p12 = pnand %p2029_p6, %p2025_p10 }
  0x41   : > { %2033 = shalt.err (!%p2030_p12)
}
  0x42   : > { %s2034_s7 = scalar_lea.vmem %s222_s12, 1024  ;;  %s2125_s30 = smov [#allocation3]  }
  0x43   : > { %p2035_p3 = scmp.ne.s32.totalorder %s222_s12, %s2034_s7  ;;  %s2039_s8 = sshll.u32 %s2125_s30, 4  ;;  %s2040_s8 = int_to_ptr.vmem [resolvable:$false] %s2039_s8 }
  0x44   : > { %s2041_s9 = scalar_lea.vmem %s2040_s8, 2048  ;;  %p2042_p13 = scmp.lt.s32.totalorder %s222_s12, %s2040_s8 }
  0x45   : > { %p2037_p9 = pnand %p2035_p3, %p2023_p0  ;;  %p2043_p5 = scmp.lt.s32.totalorder %s2041_s9, %s2034_s7 }
  0x47   : > { %p2038_p7 = pneg %p2037_p9  ;;  %p2044_p4 = por %p2043_p5, %p2042_p13 }
  0x49   : > { %p2045_p8 = pnand %p2044_p4, %p2038_p7 }
  0x4b   : > { %2048 = shalt.err (!%p2045_p8)
}
  0x4c   : > { %1712 = dma.hbm_to_vmem [thread:$0]  (!%p2257_p11), %s2255_s10, 1024, %s222_s12, %s210_s14  }
  0x4d   : > { %p2362_p10 = scmp.ne.s32.totalorder %s2357_s27, 0 }
  0x4e   : > { %s2278_s11 = sand.u32 (!%p2362_p10), 1, %s2109_s21   ;;  %p2363_p0 = scmp.ne.s32.totalorder (!%p2362_p10), %s2355_s25, 0 }
  0x4f   : > { %230 = sbr.rel (%p2362_p10) target bundleno = 633 (0x279), region = 40  ;;  %s1514_s15 = sshll.u32 (!%p2362_p10), %s2278_s11, 6 }
  0x50   : > { %s233_s16 = scalar_lea.sflag (!%p2362_p10), [#allocation4], %s2278_s11  ;;  %s2282_s17 = scalar_lea.vmem (!%p2362_p10), [#allocation3], %s1514_s15 }
  0x54   : > { %2092 = dma.done.wait (%p2363_p0), %s233_s16, 1024  }
  0x55   : > { %2094 = vsyncadd (%p2363_p0), %s233_s16, 4294966272  ;;  %p2364_p4 = scmp.eq.s32.totalorder %s2181_s0, 0 }
  0x57   : > { %2096 = dma.done.wait (%p2364_p4), [#allocation7], 18432   ;;  %p2365_p8 = pmov %p2364_p4 }
  0x58   : > { %v1761_v0 = vld [vmem:[#allocation6 + $0x74] ss:$8 sps:$4 sm:$0xff]   ;;  %v1765_v2 = vld [vmem:[#allocation6 + $0x70] ss:$8 sps:$4 sm:$0xff]   ;;  %v1767_v4 = vld [vmem:[#allocation6 + $0x64] ss:$8 sps:$4 sm:$0xff]  }
  0x59   : > { %2098 = vsyncadd (%p2365_p8), [#allocation7], 4294948864  ;;  %v1763_v1 = vld [vmem:[#allocation6 + $0x174] ss:$8 sps:$4 sm:$0xff]   ;;  %1058 = vmatprep.subr.bf16.mxu0 %v1761_v0  ;;  %v1766_v3 = vld [vmem:[#allocation6 + $0x170] ss:$8 sps:$4 sm:$0xff]  }
  0x5a   : > { %1099 = vmatprep.subr.bf16.mxu1 %v1763_v1  ;;  %1059 = vmatpush1.bf16.msra.mxu0 %v1765_v2  ;;  %v1769_v5 = vld [vmem:[#allocation6 + $0x164] ss:$8 sps:$4 sm:$0xff]   ;;  %v1771_v6 = vld [vmem:[#allocation6 + $0x60] ss:$8 sps:$4 sm:$0xff]   ;;  %v1773_v8 = vld [vmem:[#allocation6 + $0x54] ss:$8 sps:$4 sm:$0xff]  }
  0x5b   : > { %1100 = vmatpush1.bf16.msra.mxu1 %v1766_v3  ;;  %1060 = vmatprep.subr.bf16.mxu0 %v1767_v4  ;;  %v1772_v7 = vld [vmem:[#allocation6 + $0x160] ss:$8 sps:$4 sm:$0xff]   ;;  %v1775_v9 = vld [vmem:[#allocation6 + $0x154] ss:$8 sps:$4 sm:$0xff]   ;;  %v1777_v10 = vld [vmem:[#allocation6 + $0x50] ss:$8 sps:$4 sm:$0xff]  }
  0x5c   : > { %1101 = vmatprep.subr.bf16.mxu1 %v1769_v5  ;;  %v1778_v11 = vld [vmem:[#allocation6 + $0x150] ss:$8 sps:$4 sm:$0xff]   ;;  %v1779_v12 = vld [vmem:[#allocation6 + $0x44] ss:$8 sps:$4 sm:$0xff]   ;;  %v1783_v14 = vld [vmem:[#allocation6 + $0x40] ss:$8 sps:$4 sm:$0xff]  }
  0x5d   : > { %v1781_v13 = vld [vmem:[#allocation6 + $0x144] ss:$8 sps:$4 sm:$0xff]   ;;  %v1784_v15 = vld [vmem:[#allocation6 + $0x140] ss:$8 sps:$4 sm:$0xff]   ;;  %v1785_v16 = vld [vmem:[#allocation6 + $0x34] ss:$8 sps:$4 sm:$0xff]  }
  0x5e   : > { %1061 = vmatpush1.bf16.msra.mxu0 %v1771_v6  ;;  %v1787_v17 = vld [vmem:[#allocation6 + $0x134] ss:$8 sps:$4 sm:$0xff]   ;;  %v1789_v18 = vld [vmem:[#allocation6 + $0x30] ss:$8 sps:$4 sm:$0xff]   ;;  %v1791_v20 = vld [vmem:[#allocation6 + $0x24] ss:$8 sps:$4 sm:$0xff]  }
  0x5f   : > { %1102 = vmatpush1.bf16.msra.mxu1 %v1772_v7  ;;  %1062 = vmatprep.subr.bf16.mxu0 %v1773_v8  ;;  %v1790_v19 = vld [vmem:[#allocation6 + $0x130] ss:$8 sps:$4 sm:$0xff]   ;;  %v1793_v21 = vld [vmem:[#allocation6 + $0x124] ss:$8 sps:$4 sm:$0xff]   ;;  %v1795_v22 = vld [vmem:[#allocation6 + $0x20] ss:$8 sps:$4 sm:$0xff]  }
  0x60   : > { %1103 = vmatprep.subr.bf16.mxu1 %v1775_v9  ;;  %v1796_v23 = vld [vmem:[#allocation6 + $0x120] ss:$8 sps:$4 sm:$0xff]   ;;  %v1797_v24 = vld [vmem:[#allocation6 + $0x14] ss:$8 sps:$4 sm:$0xff]   ;;  %v1801_v26 = vld [vmem:[#allocation6 + $0x10] ss:$8 sps:$4 sm:$0xff]  }
  0x61   : > { %v1799_v25 = vld [vmem:[#allocation6 + $0x114] ss:$8 sps:$4 sm:$0xff]   ;;  %v1802_v27 = vld [vmem:[#allocation6 + $0x110] ss:$8 sps:$4 sm:$0xff]   ;;  %v1803_v28 = vld [vmem:[#allocation6 + $0x4] ss:$8 sps:$4 sm:$0xff]  }
  0x62   : > { %1063 = vmatpush1.bf16.msra.mxu0 %v1777_v10  ;;  %v1805_v29 = vld [vmem:[#allocation6 + $0x104] ss:$8 sps:$4 sm:$0xff]   ;;  %v1807_v30 = vld [vmem:[#allocation6] ss:$8 sps:$4 sm:$0xff]   ;;  %v1809_v32 = vld [vmem:[#allocation6 + $0xf4] ss:$8 sps:$4 sm:$0xff]  }
  0x63   : > { %1104 = vmatpush1.bf16.msra.mxu1 %v1778_v11  ;;  %1064 = vmatprep.subr.bf16.mxu0 %v1779_v12  ;;  %v1808_v31 = vld [vmem:[#allocation6 + $0x100] ss:$8 sps:$4 sm:$0xff]   ;;  %v1811_v33 = vld [vmem:[#allocation6 + $0x1f4] ss:$8 sps:$4 sm:$0xff]   ;;  %v1813_v34 = vld [vmem:[#allocation6 + $0xf0] ss:$8 sps:$4 sm:$0xff]  }
  0x64   : > { %1105 = vmatprep.subr.bf16.mxu1 %v1781_v13  ;;  %v1814_v35 = vld [vmem:[#allocation6 + $0x1f0] ss:$8 sps:$4 sm:$0xff]   ;;  %v1815_v36 = vld [vmem:[#allocation6 + $0xe4] ss:$8 sps:$4 sm:$0xff]   ;;  %v1819_v38 = vld [vmem:[#allocation6 + $0xe0] ss:$8 sps:$4 sm:$0xff]  }
  0x65   : > { %v1817_v37 = vld [vmem:[#allocation6 + $0x1e4] ss:$8 sps:$4 sm:$0xff]   ;;  %v1820_v39 = vld [vmem:[#allocation6 + $0x1e0] ss:$8 sps:$4 sm:$0xff]   ;;  %v1821_v40 = vld [vmem:[#allocation6 + $0xd4] ss:$8 sps:$4 sm:$0xff]  }
  0x66   : > { %1065 = vmatpush1.bf16.msra.mxu0 %v1783_v14  ;;  %v1823_v41 = vld [vmem:[#allocation6 + $0x1d4] ss:$8 sps:$4 sm:$0xff]   ;;  %v1825_v42 = vld [vmem:[#allocation6 + $0xd0] ss:$8 sps:$4 sm:$0xff]   ;;  %v1827_v44 = vld [vmem:[#allocation6 + $0xc4] ss:$8 sps:$4 sm:$0xff]  }
  0x67   : > { %1106 = vmatpush1.bf16.msra.mxu1 %v1784_v15  ;;  %1066 = vmatprep.subr.bf16.mxu0 %v1785_v16  ;;  %v1826_v43 = vld [vmem:[#allocation6 + $0x1d0] ss:$8 sps:$4 sm:$0xff]   ;;  %v1829_v45 = vld [vmem:[#allocation6 + $0x1c4] ss:$8 sps:$4 sm:$0xff]   ;;  %v1831_v47 = vld [vmem:[#allocation6 + $0xc0] ss:$8 sps:$4 sm:$0xff]  }
  0x68   : > { %1107 = vmatprep.subr.bf16.mxu1 %v1787_v17  ;;  %v273_v46 = vld [vmem:[%s2282_s17 + $0x8] sm:$0xff]  ;;  %v275_v50 = vld [vmem:[%s2282_s17 + $0x18] sm:$0xff]  ;;  %v272_v4 = vld [vmem:[%s2282_s17] sm:$0xff]  ;;  %s416_s25 = sld [smem:[#allocation2]]  ;;  %s1517_s27 = sshll.u32 %s2278_s11, 3 }
  0x69   : > { %v1832_v48 = vld [vmem:[#allocation6 + $0x1c0] ss:$8 sps:$4 sm:$0xff]   ;;  %v281_v49 = vpack.c.bf16 %v273_v46, %v273_v46  ;;  %v1833_v51 = vld [vmem:[#allocation6 + $0xb4] ss:$8 sps:$4 sm:$0xff]   ;;  %v283_v52 = vpack.c.bf16 %v275_v50, %v275_v50  ;;  %v1837_v54 = vld [vmem:[#allocation6 + $0xb0] ss:$8 sps:$4 sm:$0xff]   ;;  %v280_v8 = vpack.c.bf16 %v272_v4, %v272_v4 }
  0x6a   : > { %1067 = vmatpush1.bf16.msra.mxu0 %v1789_v18  ;;  %v1835_v53 = vld [vmem:[#allocation6 + $0x1b4] ss:$8 sps:$4 sm:$0xff]   ;;  %v1838_v55 = vld [vmem:[#allocation6 + $0x1b0] ss:$8 sps:$4 sm:$0xff]   ;;  %v1839_v56 = vld [vmem:[#allocation6 + $0xa4] ss:$8 sps:$4 sm:$0xff]  }
  0x6b   : > { %1108 = vmatpush1.bf16.msra.mxu1 %v1790_v19  ;;  %1068 = vmatprep.subr.bf16.mxu0 %v1791_v20  ;;  %v1841_v57 = vld [vmem:[#allocation6 + $0x1a4] ss:$8 sps:$4 sm:$0xff]   ;;  %v1843_v58 = vld [vmem:[#allocation6 + $0xa0] ss:$8 sps:$4 sm:$0xff]   ;;  %v1845_v60 = vld [vmem:[#allocation6 + $0x94] ss:$8 sps:$4 sm:$0xff]  }
  0x6c   : > { %1109 = vmatprep.subr.bf16.mxu1 %v1793_v21  ;;  %1090 = vmatprep.mubr.bf16.mxu0 %v281_v49  ;;  %v1844_v59 = vld [vmem:[#allocation6 + $0x1a0] ss:$8 sps:$4 sm:$0xff]   ;;  %v1847_v61 = vld [vmem:[#allocation6 + $0x194] ss:$8 sps:$4 sm:$0xff]   ;;  %v1849_v62 = vld [vmem:[#allocation6 + $0x90] ss:$8 sps:$4 sm:$0xff]  }
  0x6d   : > { %1131 = vmatprep.mubr.bf16.mxu1 %v283_v52  ;;  %v1850_v63 = vld [vmem:[#allocation6 + $0x190] ss:$8 sps:$4 sm:$0xff]   ;;  %v1851_v0 = vld [vmem:[#allocation6 + $0x84] ss:$8 sps:$4 sm:$0xff]   ;;  %v1855_v2 = vld [vmem:[#allocation6 + $0x80] ss:$8 sps:$4 sm:$0xff]  }
  0x6e   : > { %1069 = vmatpush1.bf16.msra.mxu0 %v1795_v22  ;;  %v1853_v1 = vld [vmem:[#allocation6 + $0x184] ss:$8 sps:$4 sm:$0xff]   ;;  %v1856_v3 = vld [vmem:[#allocation6 + $0x180] ss:$8 sps:$4 sm:$0xff]   ;;  %v274_v5 = vld [vmem:[%s2282_s17 + $0x10] sm:$0xff]  ;;  %s1664_s13 = sshll.u32 %s2181_s0, 7 }
  0x6f   : > { %1110 = vmatpush1.bf16.msra.mxu1 %v1796_v23  ;;  %1070 = vmatprep.subr.bf16.mxu0 %v1797_v24  ;;  %v1859_v6 = vld [vmem:[#allocation6 + $0x274] ss:$8 sps:$4 sm:$0xff]   ;;  %v282_v9 = vpack.c.bf16 %v274_v5, %v274_v5  ;;  %v1857_v10 = vld [vmem:[#allocation6 + $0x270] ss:$8 sps:$4 sm:$0xff]   ;;  %v1865_v12 = vld [vmem:[#allocation6 + $0x264] ss:$8 sps:$4 sm:$0xff]   ;;  %s2308_s7 = scalar_lea.hbm %s2350_s5, %s1664_s13 }
  0x70   : > { %1111 = vmatprep.subr.bf16.mxu1 %v1799_v25  ;;  %v1862_v7 = vld [vmem:[#allocation6 + $0x374] ss:$8 sps:$4 sm:$0xff]   ;;  %v1860_v11 = vld [vmem:[#allocation6 + $0x370] ss:$8 sps:$4 sm:$0xff]   ;;  %v1868_v13 = vld [vmem:[#allocation6 + $0x364] ss:$8 sps:$4 sm:$0xff]  }
  0x71   : > { %v1863_v14 = vld [vmem:[#allocation6 + $0x260] ss:$8 sps:$4 sm:$0xff]   ;;  %v1871_v16 = vld [vmem:[#allocation6 + $0x254] ss:$8 sps:$4 sm:$0xff]   ;;  %v1869_v18 = vld [vmem:[#allocation6 + $0x250] ss:$8 sps:$4 sm:$0xff]  }
  0x72   : > { %1071 = vmatpush1.bf16.msra.mxu0 %v1801_v26  ;;  %v1866_v15 = vld [vmem:[#allocation6 + $0x360] ss:$8 sps:$4 sm:$0xff]   ;;  %v1874_v17 = vld [vmem:[#allocation6 + $0x354] ss:$8 sps:$4 sm:$0xff]   ;;  %v1872_v19 = vld [vmem:[#allocation6 + $0x350] ss:$8 sps:$4 sm:$0xff]  }
  0x73   : > { %1112 = vmatpush1.bf16.msra.mxu1 %v1802_v27  ;;  %1072 = vmatprep.subr.bf16.mxu0 %v1803_v28  ;;  %v1877_v20 = vld [vmem:[#allocation6 + $0x244] ss:$8 sps:$4 sm:$0xff]   ;;  %v1875_v22 = vld [vmem:[#allocation6 + $0x240] ss:$8 sps:$4 sm:$0xff]   ;;  %v1883_v24 = vld [vmem:[#allocation6 + $0x234] ss:$8 sps:$4 sm:$0xff]  }
  0x74   : > { %1113 = vmatprep.subr.bf16.mxu1 %v1805_v29  ;;  %v1880_v21 = vld [vmem:[#allocation6 + $0x344] ss:$8 sps:$4 sm:$0xff]   ;;  %v1878_v23 = vld [vmem:[#allocation6 + $0x340] ss:$8 sps:$4 sm:$0xff]   ;;  %v1886_v25 = vld [vmem:[#allocation6 + $0x334] ss:$8 sps:$4 sm:$0xff]  }
  0x75   : > { %v1881_v26 = vld [vmem:[#allocation6 + $0x230] ss:$8 sps:$4 sm:$0xff]   ;;  %v1889_v28 = vld [vmem:[#allocation6 + $0x224] ss:$8 sps:$4 sm:$0xff]   ;;  %v1911_v50 = vld [vmem:[#allocation6 + $0x2e0] ss:$8 sps:$4 sm:$0xff]  }
  0x76   : > { %1073 = vmatpush1.bf16.msra.mxu0 %v1807_v30  ;;  %v1884_v27 = vld [vmem:[#allocation6 + $0x330] ss:$8 sps:$4 sm:$0xff]   ;;  %v1892_v29 = vld [vmem:[#allocation6 + $0x324] ss:$8 sps:$4 sm:$0xff]   ;;  %v1887_v30 = vld [vmem:[#allocation6 + $0x220] ss:$8 sps:$4 sm:$0xff]  }
  0x77   : > { %1114 = vmatpush1.bf16.msra.mxu1 %v1808_v31  ;;  %1074 = vmatprep.subr.bf16.mxu0 %v1809_v32  ;;  %v1890_v31 = vld [vmem:[#allocation6 + $0x320] ss:$8 sps:$4 sm:$0xff]   ;;  %v1895_v32 = vld [vmem:[#allocation6 + $0x214] ss:$8 sps:$4 sm:$0xff]   ;;  %v1905_v46 = vld [vmem:[#allocation6 + $0x2f0] ss:$8 sps:$4 sm:$0xff]  }
  0x78   : > { %1115 = vmatprep.subr.bf16.mxu1 %v1811_v33  ;;  %v1898_v33 = vld [vmem:[#allocation6 + $0x314] ss:$8 sps:$4 sm:$0xff]   ;;  %v1916_v49 = vld [vmem:[#allocation6 + $0x3e4] ss:$8 sps:$4 sm:$0xff]   ;;  %s270_s14 = scalar_lea.vmem [#allocation9], %s1517_s27  ;;  %s1403_s30 = scalar_lea.sflag [#allocation5], %s2278_s11 }
  0x79   : > { %v1919_v52 = vld [vmem:[#allocation6 + $0x2d4] ss:$8 sps:$4 sm:$0xff]   ;;  %s1416_s19 = sshll.u32 %s270_s14, 4  ;;  %p2366_p11 = scmp.ne.s32.totalorder %s2360_s29, 0  ;;  %s1417_s19 = int_to_ptr.vmem [resolvable:$true] %s1416_s19 }
  0x7a   : > { %1075 = vmatpush2.bf16.msra.mxu0 %v1813_v34  ;;  %v1893_v34 = vld [vmem:[#allocation6 + $0x210] ss:$8 sps:$4 sm:$0xff]   ;;  %v1943_v4 = vld [vmem:[#allocation6 + $0x294] ss:$8 sps:$4 sm:$0xff]   ;;  %s2049_s8 = scalar_lea.vmem %s1417_s19, 128  ;;  %s2126_s0 = smov [#allocation9]  }
  0x7b   : > { %1116 = vmatpush2.bf16.msra.mxu1 %v1814_v35  ;;  %1076 = vmatprep.subr.bf16.mxu0 %v1815_v36  ;;  %v1896_v35 = vld [vmem:[#allocation6 + $0x310] ss:$8 sps:$4 sm:$0xff]   ;;  %v277_v36 = vld [vmem:[%s2282_s17 + $0x28] sm:$0xff]  ;;  %v1946_v5 = vld [vmem:[#allocation6 + $0x394] ss:$8 sps:$4 sm:$0xff]   ;;  %p2050_p7 = scmp.ne.s32.totalorder %s1417_s19, %s2049_s8  ;;  %s2053_s9 = sshll.u32 %s2126_s0, 4  ;;  %s2054_s9 = int_to_ptr.vmem [resolvable:$false] %s2053_s9 }
  0x7c   : > { %1117 = vmatprep.subr.bf16.mxu1 %v1817_v37  ;;  %v1901_v37 = vld [vmem:[#allocation6 + $0x204] ss:$8 sps:$4 sm:$0xff]   ;;  %s2055_s15 = scalar_lea.vmem %s2054_s9, 256  ;;  %p2056_p6 = scmp.lt.s32.totalorder %s1417_s19, %s2054_s9 }
  0x7d   : > { %p2051_p1 = pnand %p2050_p7, %p2366_p11  ;;  %p2057_p12 = scmp.lt.s32.totalorder %s2055_s15, %s2049_s8 }
  0x7e   : > { %1077 = vmatpush2.bf16.msra.mxu0 %v1819_v38  ;;  %v1904_v38 = vld [vmem:[#allocation6 + $0x304] ss:$8 sps:$4 sm:$0xff]  }
  0x7f   : > { %1118 = vmatpush2.bf16.msra.mxu1 %v1820_v39  ;;  %1078 = vmatprep.subr.bf16.mxu0 %v1821_v40  ;;  %v285_v39 = vpack.c.bf16 %v277_v36, %v277_v36  ;;  %v279_v40 = vld [vmem:[%s2282_s17 + $0x38] sm:$0xff]  ;;  %p2052_p2 = pneg %p2051_p1  ;;  %p2058_p3 = por %p2057_p12, %p2056_p6 }
  0x80   : > { %1119 = vmatprep.subr.bf16.mxu1 %v1823_v41  ;;  %v287_v41 = vpack.c.bf16 %v279_v40, %v279_v40  ;;  %v417_v40 = vstv %s416_s25 }
  0x81   : > { %p2059_p9 = pnand %p2058_p3, %p2052_p2 }
  0x82   : > { %1079 = vmatpush2.bf16.msra.mxu0 %v1825_v42  ;;  %v1899_v42 = vld [vmem:[#allocation6 + $0x200] ss:$8 sps:$4 sm:$0xff]  }
  0x83   : > { %1120 = vmatpush2.bf16.msra.mxu1 %v1826_v43  ;;  %1080 = vmatprep.subr.bf16.mxu0 %v1827_v44  ;;  %v1902_v43 = vld [vmem:[#allocation6 + $0x300] ss:$8 sps:$4 sm:$0xff]   ;;  %v1907_v44 = vld [vmem:[#allocation6 + $0x2f4] ss:$8 sps:$4 sm:$0xff]  }
  0x84   : > { %1121 = vmatprep.subr.bf16.mxu1 %v1829_v45  ;;  %v1910_v45 = vld [vmem:[#allocation6 + $0x3f4] ss:$8 sps:$4 sm:$0xff]  }
  0x86   : > { %1081 = vmatpush2.bf16.msra.mxu0 %v1831_v47  ;;  %v1908_v47 = vld [vmem:[#allocation6 + $0x3f0] ss:$8 sps:$4 sm:$0xff]  }
  0x87   : > { %1122 = vmatpush2.bf16.msra.mxu1 %v1832_v48  ;;  %1082 = vmatprep.subr.bf16.mxu0 %v1833_v51  ;;  %v1913_v48 = vld [vmem:[#allocation6 + $0x2e4] ss:$8 sps:$4 sm:$0xff]   ;;  %v1914_v51 = vld [vmem:[#allocation6 + $0x3e0] ss:$8 sps:$4 sm:$0xff]  }
  0x88   : > { %1123 = vmatprep.subr.bf16.mxu1 %v1835_v53  ;;  %v1922_v53 = vld [vmem:[#allocation6 + $0x3d4] ss:$8 sps:$4 sm:$0xff]  }
  0x8a   : > { %1083 = vmatpush2.bf16.msra.mxu0 %v1837_v54  ;;  %v1917_v54 = vld [vmem:[#allocation6 + $0x2d0] ss:$8 sps:$4 sm:$0xff]  }
  0x8b   : > { %1124 = vmatpush2.bf16.msra.mxu1 %v1838_v55  ;;  %1084 = vmatprep.subr.bf16.mxu0 %v1839_v56  ;;  %v1920_v55 = vld [vmem:[#allocation6 + $0x3d0] ss:$8 sps:$4 sm:$0xff]   ;;  %v1925_v56 = vld [vmem:[#allocation6 + $0x2c4] ss:$8 sps:$4 sm:$0xff]  }
  0x8c   : > { %1125 = vmatprep.subr.bf16.mxu1 %v1841_v57  ;;  %v1928_v57 = vld [vmem:[#allocation6 + $0x3c4] ss:$8 sps:$4 sm:$0xff]  }
  0x8e   : > { %1085 = vmatpush2.bf16.msra.mxu0 %v1843_v58  ;;  %v1923_v58 = vld [vmem:[#allocation6 + $0x2c0] ss:$8 sps:$4 sm:$0xff]  }
  0x8f   : > { %1126 = vmatpush2.bf16.msra.mxu1 %v1844_v59  ;;  %1086 = vmatprep.subr.bf16.mxu0 %v1845_v60  ;;  %v1926_v59 = vld [vmem:[#allocation6 + $0x3c0] ss:$8 sps:$4 sm:$0xff]   ;;  %v1931_v60 = vld [vmem:[#allocation6 + $0x2b4] ss:$8 sps:$4 sm:$0xff]  }
  0x90   : > { %1127 = vmatprep.subr.bf16.mxu1 %v1847_v61  ;;  %v1934_v61 = vld [vmem:[#allocation6 + $0x3b4] ss:$8 sps:$4 sm:$0xff]  }
  0x92   : > { %1087 = vmatpush2.bf16.msra.mxu0 %v1849_v62  ;;  %v1929_v62 = vld [vmem:[#allocation6 + $0x2b0] ss:$8 sps:$4 sm:$0xff]  }
  0x93   : > { %1128 = vmatpush2.bf16.msra.mxu1 %v1850_v63  ;;  %1088 = vmatprep.subr.bf16.mxu0 %v1851_v0  ;;  %v1932_v63 = vld [vmem:[#allocation6 + $0x3b0] ss:$8 sps:$4 sm:$0xff]   ;;  %v1937_v0 = vld [vmem:[#allocation6 + $0x2a4] ss:$8 sps:$4 sm:$0xff]  }
  0x94   : > { %1129 = vmatprep.subr.bf16.mxu1 %v1853_v1  ;;  %v1940_v1 = vld [vmem:[#allocation6 + $0x3a4] ss:$8 sps:$4 sm:$0xff]  }
  0x96   : > { %1089 = vmatpush2.bf16.msra.mxu0 %v1855_v2  ;;  %v1935_v2 = vld [vmem:[#allocation6 + $0x2a0] ss:$8 sps:$4 sm:$0xff]  }
  0x97   : > { %1130 = vmatpush2.bf16.msra.mxu1 %v1856_v3  ;;  %1140 = vmatprep.subr.bf16.mxu0 %v1859_v6  ;;  %v1938_v3 = vld [vmem:[#allocation6 + $0x3a0] ss:$8 sps:$4 sm:$0xff]   ;;  %v1941_v6 = vld [vmem:[#allocation6 + $0x290] ss:$8 sps:$4 sm:$0xff]  }
  0x98   : > { %1181 = vmatprep.subr.bf16.mxu1 %v1862_v7  ;;  %v1944_v7 = vld [vmem:[#allocation6 + $0x390] ss:$8 sps:$4 sm:$0xff]  }
  0x99   : > { %1091 = vmatmul.mubr.bf16.vlgmr.msra.gmra.mxu0 %v280_v8  ;;  %v1949_v8 = vld [vmem:[#allocation6 + $0x284] ss:$8 sps:$4 sm:$0xff]  }
  0x9a   : > { %1132 = vmatmul.mubr.bf16.vlgmr.msra.gmra.mxu1 %v282_v9  ;;  %1141 = vmatpush1.bf16.msra.mxu0 %v1857_v10  ;;  %v1952_v9 = vld [vmem:[#allocation6 + $0x384] ss:$8 sps:$4 sm:$0xff]   ;;  %v1947_v10 = vld [vmem:[#allocation6 + $0x280] ss:$8 sps:$4 sm:$0xff]  }
  0x9b   : > { %1182 = vmatpush1.bf16.msra.mxu1 %v1860_v11  ;;  %1142 = vmatprep.subr.bf16.mxu0 %v1865_v12  ;;  %v1950_v11 = vld [vmem:[#allocation6 + $0x380] ss:$8 sps:$4 sm:$0xff]  }
  0x9c   : > { %1183 = vmatprep.subr.bf16.mxu1 %v1868_v13  ;;  %1172 = vmatprep.mubr.bf16.mxu0 %v285_v39  ;;  %v276_v12 = vld [vmem:[%s2282_s17 + $0x20] sm:$0xff]  ;;  %v278_v13 = vld [vmem:[%s2282_s17 + $0x30] sm:$0xff] }
  0x9d   : > { %1213 = vmatprep.mubr.bf16.mxu1 %v287_v41 }
  0x9e   : > { %1143 = vmatpush1.bf16.msra.mxu0 %v1863_v14  ;;  %v284_v14 = vpack.c.bf16 %v276_v12, %v276_v12 }
  0x9f   : > { %1184 = vmatpush1.bf16.msra.mxu1 %v1866_v15  ;;  %1144 = vmatprep.subr.bf16.mxu0 %v1871_v16  ;;  %v286_v15 = vpack.c.bf16 %v278_v13, %v278_v13  ;;  %v1953_v16 = vld [vmem:[#allocation8 + $0x78] sm:$0xff]  }
  0xa0   : > { %1185 = vmatprep.subr.bf16.mxu1 %v1874_v17  ;;  %v1954_v17 = vld [vmem:[#allocation8 + $0x38] sm:$0xff]  }
  0xa2   : > { %1145 = vmatpush1.bf16.msra.mxu0 %v1869_v18  ;;  %v1955_v18 = vld [vmem:[#allocation8 + $0x70] sm:$0xff]  }
  0xa3   : > { %1186 = vmatpush1.bf16.msra.mxu1 %v1872_v19  ;;  %1146 = vmatprep.subr.bf16.mxu0 %v1877_v20  ;;  %v1956_v19 = vld [vmem:[#allocation8 + $0x30] sm:$0xff]   ;;  %v1957_v20 = vld [vmem:[#allocation8 + $0x68] sm:$0xff]  }
  0xa4   : > { %1187 = vmatprep.subr.bf16.mxu1 %v1880_v21  ;;  %v1958_v21 = vld [vmem:[#allocation8 + $0x28] sm:$0xff]  }
  0xa6   : > { %1147 = vmatpush1.bf16.msra.mxu0 %v1875_v22  ;;  %v1959_v22 = vld [vmem:[#allocation8 + $0x60] sm:$0xff]  }
  0xa7   : > { %1188 = vmatpush1.bf16.msra.mxu1 %v1878_v23  ;;  %1148 = vmatprep.subr.bf16.mxu0 %v1883_v24  ;;  %v1960_v23 = vld [vmem:[#allocation8 + $0x20] sm:$0xff]   ;;  %v1961_v24 = vld [vmem:[#allocation8 + $0x58] sm:$0xff]  }
  0xa8   : > { %1189 = vmatprep.subr.bf16.mxu1 %v1886_v25  ;;  %v1962_v25 = vld [vmem:[#allocation8 + $0x18] sm:$0xff]  }
  0xaa   : > { %1149 = vmatpush1.bf16.msra.mxu0 %v1881_v26  ;;  %v1963_v26 = vld [vmem:[#allocation8 + $0x50] sm:$0xff]  }
  0xab   : > { %1190 = vmatpush1.bf16.msra.mxu1 %v1884_v27  ;;  %1150 = vmatprep.subr.bf16.mxu0 %v1889_v28  ;;  %v1964_v27 = vld [vmem:[#allocation8 + $0x10] sm:$0xff]   ;;  %v1965_v28 = vld [vmem:[#allocation8 + $0x48] sm:$0xff]  }
  0xac   : > { %1191 = vmatprep.subr.bf16.mxu1 %v1892_v29  ;;  %v1966_v29 = vld [vmem:[#allocation8 + $0x8] sm:$0xff]  }
  0xae   : > { %1151 = vmatpush1.bf16.msra.mxu0 %v1887_v30  ;;  %v1967_v30 = vld [vmem:[#allocation8 + $0x40] sm:$0xff]  }
  0xaf   : > { %1192 = vmatpush1.bf16.msra.mxu1 %v1890_v31  ;;  %1152 = vmatprep.subr.bf16.mxu0 %v1895_v32  ;;  %v1968_v31 = vld [vmem:[#allocation8] sm:$0xff]  }
  0xb0   : > { %1193 = vmatprep.subr.bf16.mxu1 %v1898_v33 }
  0xb2   : > { %1153 = vmatpush1.bf16.msra.mxu0 %v1893_v34 }
  0xb3   : > { %1194 = vmatpush1.bf16.msra.mxu1 %v1896_v35  ;;  %1154 = vmatprep.subr.bf16.mxu0 %v1901_v37 }
  0xb4   : > { %1195 = vmatprep.subr.bf16.mxu1 %v1904_v38 }
  0xb6   : > { %1155 = vmatpush1.bf16.msra.mxu0 %v1899_v42 }
  0xb7   : > { %1196 = vmatpush1.bf16.msra.mxu1 %v1902_v43  ;;  %1156 = vmatprep.subr.bf16.mxu0 %v1907_v44 }
  0xb8   : > { %1197 = vmatprep.subr.bf16.mxu1 %v1910_v45 }
  0xba   : > { %1157 = vmatpush2.bf16.msra.mxu0 %v1905_v46 }
  0xbb   : > { %1198 = vmatpush2.bf16.msra.mxu1 %v1908_v47  ;;  %1158 = vmatprep.subr.bf16.mxu0 %v1913_v48 }
  0xbc   : > { %1199 = vmatprep.subr.bf16.mxu1 %v1916_v49 }
  0xbe   : > { %1159 = vmatpush2.bf16.msra.mxu0 %v1911_v50 }
  0xbf   : > { %1200 = vmatpush2.bf16.msra.mxu1 %v1914_v51  ;;  %1160 = vmatprep.subr.bf16.mxu0 %v1919_v52 }
  0xc0   : > { %1201 = vmatprep.subr.bf16.mxu1 %v1922_v53 }
  0xc2   : > { %1161 = vmatpush2.bf16.msra.mxu0 %v1917_v54 }
  0xc3   : > { %1202 = vmatpush2.bf16.msra.mxu1 %v1920_v55  ;;  %1162 = vmatprep.subr.bf16.mxu0 %v1925_v56 }
  0xc4   : > { %1203 = vmatprep.subr.bf16.mxu1 %v1928_v57 }
  0xc6   : > { %1163 = vmatpush2.bf16.msra.mxu0 %v1923_v58 }
  0xc7   : > { %1204 = vmatpush2.bf16.msra.mxu1 %v1926_v59  ;;  %1164 = vmatprep.subr.bf16.mxu0 %v1931_v60 }
  0xc8   : > { %1205 = vmatprep.subr.bf16.mxu1 %v1934_v61 }
  0xca   : > { %1165 = vmatpush2.bf16.msra.mxu0 %v1929_v62  ;;  %v1646_v62 = vld [vmem:[%s2349_s4] ss:$0 sm:$0xff] }
  0xcb   : > { %1206 = vmatpush2.bf16.msra.mxu1 %v1932_v63  ;;  %1166 = vmatprep.subr.bf16.mxu0 %v1937_v0 }
  0xcc   : > { %1207 = vmatprep.subr.bf16.mxu1 %v1940_v1 }
  0xce   : > { %1167 = vmatpush2.bf16.msra.mxu0 %v1935_v2 }
  0xcf   : > { %1208 = vmatpush2.bf16.msra.mxu1 %v1938_v3  ;;  %1168 = vmatprep.subr.bf16.mxu0 %v1943_v4 }
  0xd0   : > { %1209 = vmatprep.subr.bf16.mxu1 %v1946_v5 }
  0xd2   : > { %1169 = vmatpush2.bf16.msra.mxu0 %v1941_v6 }
  0xd3   : > { %1210 = vmatpush2.bf16.msra.mxu1 %v1944_v7  ;;  %1170 = vmatprep.subr.bf16.mxu0 %v1949_v8 }
  0xd4   : > { %1211 = vmatprep.subr.bf16.mxu1 %v1952_v9 }
  0xd6   : > { %1171 = vmatpush2.bf16.msra.mxu0 %v1947_v10 }
  0xd7   : > { %1212 = vmatpush2.bf16.msra.mxu1 %v1950_v11  ;;  %1668 = vmatprep.subr.bf16.mxu0 %v1953_v16 }
  0xd9   : > { %1173 = vmatmul.mubr.bf16.vlgmr.msra.gmra.mxu0 %v284_v14 }
  0xda   : > { %1214 = vmatmul.mubr.bf16.vlgmr.msra.gmra.mxu1 %v286_v15  ;;  %1669 = vmatpush3.bf16.msra.mxu0 %v1954_v17 }
  0xdb   : > { %1670 = vmatprep.subr.bf16.mxu0 %v1955_v18 }
  0xde   : > { %1671 = vmatpush3.bf16.msra.mxu0 %v1956_v19 }
  0xdf   : > { %1672 = vmatprep.subr.bf16.mxu0 %v1957_v20 }
  0xe2   : > { %1673 = vmatpush3.bf16.msra.mxu0 %v1958_v21 }
  0xe3   : > { %1674 = vmatprep.subr.bf16.mxu0 %v1959_v22 }
  0xe6   : > { %1675 = vmatpush3.bf16.msra.mxu0 %v1960_v23 }
  0xe7   : > { %1676 = vmatprep.subr.bf16.mxu0 %v1961_v24 }
  0xea   : > { %1677 = vmatpush3.bf16.msra.mxu0 %v1962_v25 }
  0xeb   : > { %1678 = vmatprep.subr.bf16.mxu0 %v1963_v26 }
  0xee   : > { %1679 = vmatpush3.bf16.msra.mxu0 %v1964_v27 }
  0xef   : > { %1680 = vmatprep.subr.bf16.mxu0 %v1965_v28 }
  0xf2   : > { %1681 = vmatpush3.bf16.msra.mxu0 %v1966_v29 }
  0xf3   : > { %1682 = vmatprep.subr.bf16.mxu0 %v1967_v30 }
  0xf6   : > { %1683 = vmatpush3.bf16.msra.mxu0 %v1968_v31 }
 0x159   : > { %v1092_v32 = vpop.f32.mrf.mxu0 }
 0x15a   : > { %v1133_v33 = vpop.f32.mrf.mxu1  ;;  %v1093_v41 = vadd.f32 %v1092_v32, %v417_v40 }
 0x15b   : > { %v1094_v34 = vpop.f32.mrf.mxu0 }
 0x15c   : > { %v1135_v35 = vpop.f32.mrf.mxu1  ;;  %v1095_v42 = vadd.f32 %v1094_v34, %v417_v40  ;;  %v1134_v43 = vadd.f32 %v1133_v33, %v1093_v41 }
 0x15d   : > { %v1096_v36 = vpop.f32.mrf.mxu0 }
 0x15e   : > { %v1137_v37 = vpop.f32.mrf.mxu1  ;;  %v1136_v46 = vadd.f32 %v1135_v35, %v1095_v42 }
 0x15f   : > { %v1097_v38 = vpop.f32.mrf.mxu0 }
 0x160   : > { %v1138_v39 = vpop.f32.mrf.mxu1 }
 0x199   : > { %v1174_v44 = vpop.f32.mrf.mxu0 }
 0x19a   : > { %v1215_v45 = vpop.f32.mrf.mxu1  ;;  %v1175_v47 = vadd.f32 %v1174_v44, %v1134_v43 }
 0x19b   : > { %v1176_v48 = vpop.f32.mrf.mxu0 }
 0x19c   : > { %v1217_v49 = vpop.f32.mrf.mxu1  ;;  %v1216_v50 = vadd.f32 %v1215_v45, %v1175_v47  ;;  %v1177_v51 = vadd.f32 %v1176_v48, %v1136_v46 }
 0x19d   : > { %v1178_v52 = vpop.f32.mrf.mxu0 }
 0x19e   : > { %v1219_v53 = vpop.f32.mrf.mxu1  ;;  %v1218_v54 = vadd.f32 %v1217_v49, %v1177_v51  ;;  %v1222_v55 = vmax.f32 %v1216_v50, 0.0 }
 0x19f   : > { %v1179_v56 = vpop.f32.mrf.mxu0 }
 0x1a0   : > { %v1220_v57 = vpop.f32.mrf.mxu1  ;;  %v1223_v58 = vmax.f32 %v1218_v54, 0.0  ;;  %v1224_v60 = vpack.c.bf16 %v1222_v55, %v1222_v55 }
 0x1a2   : > { %v1225_v59 = vpack.c.bf16 %v1223_v58, %v1223_v58 }
 0x1a4   : > { %1393 = vmatprep.mubr.bf16.mxu0 %v1225_v59 }
 0x1a5   : > { %1394 = vmatmul.mubr.bf16.vlgmr.msra.gmra.mxu0 %v1224_v60 }
 0x265   : > { %v1684_v61 = vpop.f32.mrf.mxu0 }
 0x267   : > { %v1685_v63 = vpop.f32.mrf.mxu0 }
 0x268   : > { %v1686_v0 = vadd.f32 %v1685_v63, %v1684_v61 }
 0x269   : > { %v1687_v1 = vpop.f32.mrf.mxu0 }
 0x26a   : > { %v1396_v2 = vadd.f32 %v1686_v0, %v1646_v62 }
 0x26b   : > { %v1688_v3 = vpop.f32.mrf.mxu0 }
 0x26c   : > { %1401 = vst [vmem:[%s270_s14] sm:$0xff] %v1396_v2 }
 0x26d   : > { %2062 = shalt.err (!%p2059_p9)
}
 0x26e   : > { %s2063_s16 = scalar_lea.hbm %s2308_s7, 128  ;;  %s2067_s25 = scalar_lea.hbm %s2350_s5, 256 }
 0x26f   : > { %p2064_p13 = scmp.ne.s32.totalorder %s2308_s7, %s2063_s16  ;;  %p2068_p0 = scmp.lt.s32.totalorder %s2308_s7, %s2350_s5 }
 0x270   : > { %p2069_p4 = scmp.lt.s32.totalorder %s2067_s25, %s2063_s16 }
 0x271   : > { %p2065_p5 = pnand %p2064_p13, %p2366_p11 }
 0x272   : > { %p2070_p8 = por %p2069_p4, %p2068_p0 }
 0x273   : > { %p2066_p10 = pneg %p2065_p5 }
 0x275   : > { %p2071_p7 = pnand %p2070_p8, %p2066_p10 }
 0x277   : > { %2074 = shalt.err (!%p2071_p7)
}
 0x278   : > { %1700 = dma.vmem_to_hbm [thread:$0]  (%p2366_p11), %s1417_s19, 128, %s2308_s7, %s1403_s30  }
 0x279 PF: > { %s1428_s12 = sand.u32 1, %s2105_s20   ;;  %p2367_p1 = scmp.ne.s32.totalorder %s2356_s26, 0 }
 0x27a   : > { %p2368_p2 = scmp.ge.s32.totalorder %s2117_s23, 2  ;;  %s1429_s13 = scalar_lea.sflag [#allocation5], %s1428_s12 }
 0x27c   : > { %p1714_p6 = pnand %p2368_p2, %p2367_p1 }
 0x27e   : > { %p1715_p12 = pneg %p1714_p6 }
 0x280   : > { %2100 = dma.done.wait (%p1715_p12), %s1429_s13, 128  }
 0x281   : > { %2102 = vsyncadd (%p1715_p12), %s1429_s13, 4294967168  ;;  %p20_p3 = scmp.ge.s32.totalorder %s2232_s18, 4   ;;  %s2369_s20 = smov %s2109_s21 }
 0x282   : > { %s2370_s21 = smov %s2113_s22  ;;  %s2371_s22 = smov %s2241_s28 }
 0x283   : > { %s2372_s23 = smov %s2232_s18  ;;  %22 = sbr.rel (!%p20_p3) target bundleno = 8 (0x8), region = 93 }
 0x288   :  { %1434 = vsyncpa [#allocation4], 1 }
 0x289   :  { %1436 = vsyncpa [#allocation4 + $0x1], 1 }
 0x28a   :  { %1437 = vsyncpa [#allocation7], 1 }
 0x28b   :  { %1438 = vsyncpa [#allocation5], 1 }
 0x28c   :  { %1440 = vsyncpa [#allocation5 + $0x1], 1 }

</bundles_post_ra>
